<compile_context>
chip_gen: v6e
topology: v6e:2x2x1
jax: 0.10.0
libtpu: 0.0.40
codegen_flags: <defaults>
</compile_context>

<pallas_src>
import functools

import jax
import jax.numpy as jnp
from jax import lax
from jax.experimental import pallas as pl
from jax.experimental.pallas import tpu as pltpu


def _round_up(n, m):
    return ((n + m - 1) // m) * m


def _pick_batch_tile(batch):
    for cand in (512, 256, 128, 64, 32, 16, 8):
        if batch % cand == 0:
            return cand
    return batch  # odd / tiny batch: one full-extent tile (legal block)


# ----------------------------------------------------------------------------
# Pass 1: batch statistics -> folded BN scale/shift   (grid axis "arbitrary")
# ----------------------------------------------------------------------------
def _stats_kernel(x_ref, w1_ref, gamma_ref, beta_ref,
                  scale_ref, shift_ref, *, inv_batch, eps):
    i = pl.program_id(0)

    @pl.when(i == 0)
    def _():
        scale_ref[...] = jnp.zeros_like(scale_ref)   # running sum(h)
        shift_ref[...] = jnp.zeros_like(shift_ref)   # running sum(h*h)

    # fc1 (bias dropped: a per-feature constant cancels exactly under
    # training-mode BatchNorm).  bf16 operands, f32 accumulation on the MXU.
    h = jnp.dot(x_ref[...].astype(jnp.bfloat16), w1_ref[...],
                preferred_element_type=jnp.float32)          # (tb, 2Hp) f32

    scale_ref[...] += jnp.sum(h, axis=0, keepdims=True)
    shift_ref[...] += jnp.sum(h * h, axis=0, keepdims=True)

    @pl.when(i == pl.num_programs(0) - 1)
    def _():
        mean = scale_ref[...] * inv_batch
        # One-pass biased variance E[h^2] - mean^2 (fine for these
        # activation scales; swap to mean-shifted sums if |mean| >> std).
        var = shift_ref[...] * inv_batch - mean * mean
        scale = gamma_ref[...] * lax.rsqrt(var + eps)        # EUP rsqrt
        scale_ref[...] = scale
        shift_ref[...] = beta_ref[...] - mean * scale


# ----------------------------------------------------------------------------
# Pass 2: apply folded BN + ReLU + fc2 + L2 normalize (grid axis "parallel")
# ----------------------------------------------------------------------------
def _apply_kernel(x_ref, w1_ref, scale_ref, shift_ref, w2_ref, b2_ref, o_ref):
    # fc1 recomputed (cheap when D << 2H; avoids an HBM round-trip of h).
    h = jnp.dot(x_ref[...].astype(jnp.bfloat16), w1_ref[...],
                preferred_element_type=jnp.float32)          # (tb, 2Hp) f32
    # Folded BatchNorm + ReLU (+ dropout p=0 identity).
    # TODO(synk): dropout mask for p > 0 (torch RNG) is not reproduced; p=0 exact.
    h = jnp.maximum(h * scale_ref[...] + shift_ref[...], 0.0)
    # fc2 (output dim pre-padded lane-dense; padded cols are exactly zero).
    y = jnp.dot(h.astype(jnp.bfloat16), w2_ref[...],
                preferred_element_type=jnp.float32) + b2_ref[...]   # (tb, Hp)
    # F.normalize(p=2, dim=1, eps=1e-10) == y * rsqrt(max(sum(y^2), 1e-20)).
    sumsq = jnp.sum(y * y, axis=1, keepdims=True)            # (tb, 1)
    inv = lax.rsqrt(jnp.maximum(sumsq, 1e-20))               # single EUP op
    o_ref[...] = (y * inv).astype(o_ref.dtype)


# ----------------------------------------------------------------------------
# One-time parameter preparation (done OUTSIDE the forward path).
# ----------------------------------------------------------------------------
def prepare_params(params):
    """Transpose weights, cast to bf16, zero-pad D / 2H / H to lane-dense 128k.

    fc1's bias is intentionally dropped: with training-mode BatchNorm it
    cancels exactly (mean shifts by b1, variance is unchanged).
    """
    w1 = params["w1"]                      # (2H, D)
    gamma, beta = params["gamma"], params["beta"]
    w2, b2 = params["w2"], params["b2"]    # (H, 2H), (H,)

    h2, d = w1.shape
    h = w2.shape[0]
    d_pad = _round_up(d, 128)
    h2_pad = _round_up(h2, 128)
    h_pad = _round_up(h, 128)

    w1_t = jnp.zeros((d_pad, h2_pad), jnp.float32).at[:d, :h2].set(w1.T)
    w2_t = jnp.zeros((h2_pad, h_pad), jnp.float32).at[:h2, :h].set(w2.T)
    gamma_p = jnp.zeros((1, h2_pad), jnp.float32).at[0, :h2].set(gamma)
    beta_p = jnp.zeros((1, h2_pad), jnp.float32).at[0, :h2].set(beta)
    b2_p = jnp.zeros((1, h_pad), jnp.float32).at[0, :h].set(b2)

    return {
        "w1_t": w1_t.astype(jnp.bfloat16),   # (Dpad, 2Hpad) bf16
        "gamma": gamma_p,                    # (1, 2Hpad) f32
        "beta": beta_p,                      # (1, 2Hpad) f32
        "w2_t": w2_t.astype(jnp.bfloat16),   # (2Hpad, Hpad) bf16
        "b2": b2_p,                          # (1, Hpad)  f32
    }


# ----------------------------------------------------------------------------
# Forward wrapper: two chained pallas_calls (stats pass, apply pass).
# ----------------------------------------------------------------------------
@functools.partial(jax.jit, static_argnames=("hidden",))
def branch_forward(x, prep, *, hidden):
    b, d = x.shape
    d_pad, h2_pad = prep["w1_t"].shape
    h_pad = prep["w2_t"].shape[1]

    # Pad the fc1 contraction dim to the width baked into w1_t (no-op when D
    # is already a multiple of 128, the common production case).
    if d_pad != d:
        x = jnp.pad(x, ((0, 0), (0, d_pad - d)))

    tb = _pick_batch_tile(b)
    n_tiles = b // tb

    x_spec = pl.BlockSpec((tb, d_pad), lambda i: (i, 0))
    const2 = lambda i: (0, 0)   # weights/BN params resident across batch tiles
    vmem_cap = 48 * 1024 * 1024

    # ---- Pass 1: folded BN scale/shift from batch statistics --------------
    scale, shift = pl.pallas_call(
        functools.partial(_stats_kernel, inv_batch=1.0 / b, eps=1e-5),
        out_shape=(jax.ShapeDtypeStruct((1, h2_pad), jnp.float32),
                   jax.ShapeDtypeStruct((1, h2_pad), jnp.float32)),
        grid=(n_tiles,),
        in_specs=[x_spec,
                  pl.BlockSpec((d_pad, h2_pad), const2),   # w1^T (bf16)
                  pl.BlockSpec((1, h2_pad), const2),       # gamma
                  pl.BlockSpec((1, h2_pad), const2)],      # beta
        out_specs=(pl.BlockSpec((1, h2_pad), const2),
                   pl.BlockSpec((1, h2_pad), const2)),
        compiler_params=pltpu.CompilerParams(
            dimension_semantics=("arbitrary",),
            vmem_limit_bytes=vmem_cap),
    )(x, prep["w1_t"], prep["gamma"], prep["beta"])

    # ---- Pass 2: apply BN + ReLU + fc2 + L2 normalize ----------------------
    y_pad = pl.pallas_call(
        _apply_kernel,
        out_shape=jax.ShapeDtypeStruct((b, h_pad), x.dtype),
        grid=(n_tiles,),
        in_specs=[x_spec,
                  pl.BlockSpec((d_pad, h2_pad), const2),   # w1^T (bf16)
                  pl.BlockSpec((1, h2_pad), const2),       # scale
                  pl.BlockSpec((1, h2_pad), const2),       # shift
                  pl.BlockSpec((h2_pad, h_pad), const2),   # w2^T (bf16)
                  pl.BlockSpec((1, h_pad), const2)],       # b2
        out_specs=pl.BlockSpec((tb, h_pad), lambda i: (i, 0)),
        compiler_params=pltpu.CompilerParams(
            dimension_semantics=("parallel",),   # 2 TCs on v7x
            vmem_limit_bytes=vmem_cap),
    )(x, prep["w1_t"], scale, shift, prep["w2_t"], prep["b2"])

    # Perf-preferred handoff is the lane-dense padded slab (padded columns are
    # exactly zero); slice back to the module's (B, hidden) only if padded.
    return y_pad if h_pad == hidden else y_pad[:, :hidden]


# ----------------------------------------------------------------------------
# Deterministic synthetic init (PyTorch parameter layout) + pure-JAX reference.
# ----------------------------------------------------------------------------
def init_params(key, input_dim, hidden):
    h2 = 2 * hidden
    k1, k2, k3, k4, k5, k6 = jax.random.split(key, 6)
    return {
        "w1": jax.random.normal(k1, (h2, input_dim), jnp.float32) * 0.1,
        "b1": jax.random.normal(k2, (h2,), jnp.float32) * 0.1,
        "gamma": jnp.ones((h2,), jnp.float32)
                 + 0.1 * jax.random.normal(k3, (h2,), jnp.float32),
        "beta": 0.1 * jax.random.normal(k4, (h2,), jnp.float32),
        "w2": jax.random.normal(k5, (hidden, h2), jnp.float32) * 0.1,
        "b2": jax.random.normal(k6, (hidden,), jnp.float32) * 0.1,
    }


def branch_reference(x, p):
    h = x @ p["w1"].T + p["b1"]
    mean = jnp.mean(h, axis=0, keepdims=True)
    var = jnp.mean((h - mean) ** 2, axis=0, keepdims=True)
    h = (h - mean) / jnp.sqrt(var + 1e-5) * p["gamma"] + p["beta"]
    h = jnp.maximum(h, 0.0)
    y = h @ p["w2"].T + p["b2"]
    n = jnp.sqrt(jnp.sum(y * y, axis=1, keepdims=True))
    return y / jnp.maximum(n, 1e-10)


if __name__ == "__main__":
    batch, input_dim, hidden = 8, 32, 64   # fc1: 32 -> 128, fc2: 128 -> 64

    key = jax.random.PRNGKey(0)
    kx, kp = jax.random.split(key)
    x = jax.random.normal(kx, (batch, input_dim), jnp.float32)
    params = init_params(kp, input_dim, hidden)

    prep = prepare_params(params)          # one-time layout/dtype transform
    out = branch_forward(x, prep, hidden=hidden)
    out = jax.block_until_ready(out)

    ref = branch_reference(x, params)      # pure-f32 reference (keeps b1)
    assert out.shape == (batch, hidden)
    # bf16 MXU operands (with f32 accumulation) => looser tolerance than f32.
    assert jnp.allclose(out, ref, atol=2e-2, rtol=2e-2), "mismatch vs reference"

    print("KERNEL_OK")
</pallas_src>

<mosaic_0001>
module attributes {stable_mosaic.version = 11 : i64} {
  func.func @_apply_kernel(%arg0: i32, %arg1: memref<8x128xf32, #tpu.memory_space<vmem>>, %arg2: memref<128x128xbf16, #tpu.memory_space<vmem>>, %arg3: memref<1x128xf32, #tpu.memory_space<vmem>>, %arg4: memref<1x128xf32, #tpu.memory_space<vmem>>, %arg5: memref<128x128xbf16, #tpu.memory_space<vmem>>, %arg6: memref<1x128xf32, #tpu.memory_space<vmem>>, %arg7: memref<8x128xf32, #tpu.memory_space<vmem>>) attributes {dimension_semantics = [#tpu.dimension_semantics<parallel>], iteration_bounds = array<i64: 1>, scalar_prefetch = 0 : i64, scratch_operands = 0 : i64, tpu.core_type = #tpu.core_type<tc>, window_params = [{transform_indices = @transform_0, window_bounds = array<i64: 8, 128>}, {pipeline_mode = #tpu.pipeline_mode<synchronous>, transform_indices = @transform_1, window_bounds = array<i64: 128, 128>}, {pipeline_mode = #tpu.pipeline_mode<synchronous>, transform_indices = @transform_2, window_bounds = array<i64: 1, 128>}, {pipeline_mode = #tpu.pipeline_mode<synchronous>, transform_indices = @transform_3, window_bounds = array<i64: 1, 128>}, {pipeline_mode = #tpu.pipeline_mode<synchronous>, transform_indices = @transform_4, window_bounds = array<i64: 128, 128>}, {pipeline_mode = #tpu.pipeline_mode<synchronous>, transform_indices = @transform_5, window_bounds = array<i64: 1, 128>}, {transform_indices = @transform_6, window_bounds = array<i64: 8, 128>}]} {
    %c0 = arith.constant 0 : index
    %c0_0 = arith.constant 0 : index
    %0 = vector.load %arg1[%c0, %c0_0] : memref<8x128xf32, #tpu.memory_space<vmem>>, vector<8x128xf32>
    %1 = arith.truncf %0 : vector<8x128xf32> to vector<8x128xbf16>
    %c0_1 = arith.constant 0 : index
    %c0_2 = arith.constant 0 : index
    %2 = vector.load %arg2[%c0_1, %c0_2] : memref<128x128xbf16, #tpu.memory_space<vmem>>, vector<128x128xbf16>
    %cst = arith.constant dense<0.000000e+00> : vector<8x128xf32>
    %3 = tpu.matmul %1, %2, %cst {dimension_numbers = #tpu.dot_dimension_numbers<[1], [0], [0], [1], [0, 0, 1, 1], [], []>} : vector<8x128xbf16>, vector<128x128xbf16>, vector<8x128xf32> -> vector<8x128xf32>
    %c0_3 = arith.constant 0 : index
    %c0_4 = arith.constant 0 : index
    %4 = vector.load %arg3[%c0_3, %c0_4] : memref<1x128xf32, #tpu.memory_space<vmem>>, vector<1x128xf32>
    %5 = vector.broadcast %4 : vector<1x128xf32> to vector<8x128xf32>
    %6 = arith.mulf %3, %5 : vector<8x128xf32>
    %c0_5 = arith.constant 0 : index
    %c0_6 = arith.constant 0 : index
    %7 = vector.load %arg4[%c0_5, %c0_6] : memref<1x128xf32, #tpu.memory_space<vmem>>, vector<1x128xf32>
    %8 = vector.broadcast %7 : vector<1x128xf32> to vector<8x128xf32>
    %9 = arith.addf %6, %8 : vector<8x128xf32>
    %cst_7 = arith.constant 0.000000e+00 : f32
    %10 = vector.broadcast %cst_7 : f32 to vector<8x128xf32>
    %11 = arith.maximumf %9, %10 : vector<8x128xf32>
    %12 = arith.truncf %11 : vector<8x128xf32> to vector<8x128xbf16>
    %c0_8 = arith.constant 0 : index
    %c0_9 = arith.constant 0 : index
    %13 = vector.load %arg5[%c0_8, %c0_9] : memref<128x128xbf16, #tpu.memory_space<vmem>>, vector<128x128xbf16>
    %cst_10 = arith.constant dense<0.000000e+00> : vector<8x128xf32>
    %14 = tpu.matmul %12, %13, %cst_10 {dimension_numbers = #tpu.dot_dimension_numbers<[1], [0], [0], [1], [0, 0, 1, 1], [], []>} : vector<8x128xbf16>, vector<128x128xbf16>, vector<8x128xf32> -> vector<8x128xf32>
    %c0_11 = arith.constant 0 : index
    %c0_12 = arith.constant 0 : index
    %15 = vector.load %arg6[%c0_11, %c0_12] : memref<1x128xf32, #tpu.memory_space<vmem>>, vector<1x128xf32>
    %16 = vector.broadcast %15 : vector<1x128xf32> to vector<8x128xf32>
    %17 = arith.addf %14, %16 : vector<8x128xf32>
    %18 = arith.mulf %17, %17 : vector<8x128xf32>
    %cst_13 = arith.constant dense<0.000000e+00> : vector<8xf32>
    %19 = vector.multi_reduction <add>, %18, %cst_13 [1] : vector<8x128xf32> to vector<8xf32>
    %20 = vector.shape_cast %19 : vector<8xf32> to vector<8x1xf32>
    %cst_14 = arith.constant 9.99999968E-21 : f32
    %21 = vector.broadcast %cst_14 : f32 to vector<8x1xf32>
    %22 = arith.maximumf %20, %21 : vector<8x1xf32>
    %23 = math.rsqrt %22 : vector<8x1xf32>
    %24 = vector.broadcast %23 : vector<8x1xf32> to vector<8x128xf32>
    %25 = arith.mulf %17, %24 : vector<8x128xf32>
    %c0_15 = arith.constant 0 : index
    %c0_16 = arith.constant 0 : index
    %26 = vector.load %arg7[%c0_15, %c0_16] : memref<8x128xf32, #tpu.memory_space<vmem>>, vector<8x128xf32>
    tpu.vector_store %arg7[%c0_15, %c0_16], %25 {strides = array<i32>} : memref<8x128xf32, #tpu.memory_space<vmem>>, vector<8x128xf32>,
    return
  }
  func.func @transform_0(%arg0: i32) -> (i32, i32) {
    %c0_i32 = arith.constant 0 : i32
    %c0_i32_0 = arith.constant 0 : i32
    return %arg0, %c0_i32 : i32, i32
  }
  func.func @transform_1(%arg0: i32) -> (i32, i32) {
    %c0_i32 = arith.constant 0 : i32
    %c0_i32_0 = arith.constant 0 : i32
    %c0_i32_1 = arith.constant 0 : i32
    return %c0_i32, %c0_i32_0 : i32, i32
  }
  func.func @transform_2(%arg0: i32) -> (i32, i32) {
    %c0_i32 = arith.constant 0 : i32
    %c0_i32_0 = arith.constant 0 : i32
    %c0_i32_1 = arith.constant 0 : i32
    return %c0_i32, %c0_i32_0 : i32, i32
  }
  func.func @transform_3(%arg0: i32) -> (i32, i32) {
    %c0_i32 = arith.constant 0 : i32
    %c0_i32_0 = arith.constant 0 : i32
    %c0_i32_1 = arith.constant 0 : i32
    return %c0_i32, %c0_i32_0 : i32, i32
  }
  func.func @transform_4(%arg0: i32) -> (i32, i32) {
    %c0_i32 = arith.constant 0 : i32
    %c0_i32_0 = arith.constant 0 : i32
    %c0_i32_1 = arith.constant 0 : i32
    return %c0_i32, %c0_i32_0 : i32, i32
  }
  func.func @transform_5(%arg0: i32) -> (i32, i32) {
    %c0_i32 = arith.constant 0 : i32
    %c0_i32_0 = arith.constant 0 : i32
    %c0_i32_1 = arith.constant 0 : i32
    return %c0_i32, %c0_i32_0 : i32, i32
  }
  func.func @transform_6(%arg0: i32) -> (i32, i32) {
    %c0_i32 = arith.constant 0 : i32
    %c0_i32_0 = arith.constant 0 : i32
    return %arg0, %c0_i32 : i32, i32
  }
}

module attributes {stable_mosaic.version = 11 : i64} {
  func.func @_stats_kernel(%arg0: i32, %arg1: memref<8x128xf32, #tpu.memory_space<vmem>>, %arg2: memref<128x128xbf16, #tpu.memory_space<vmem>>, %arg3: memref<1x128xf32, #tpu.memory_space<vmem>>, %arg4: memref<1x128xf32, #tpu.memory_space<vmem>>, %arg5: memref<1x128xf32, #tpu.memory_space<vmem>>, %arg6: memref<1x128xf32, #tpu.memory_space<vmem>>) attributes {dimension_semantics = [#tpu.dimension_semantics<arbitrary>], iteration_bounds = array<i64: 1>, scalar_prefetch = 0 : i64, scratch_operands = 0 : i64, tpu.core_type = #tpu.core_type<tc>, window_params = [{transform_indices = @transform_0, window_bounds = array<i64: 8, 128>}, {pipeline_mode = #tpu.pipeline_mode<synchronous>, transform_indices = @transform_1, window_bounds = array<i64: 128, 128>}, {pipeline_mode = #tpu.pipeline_mode<synchronous>, transform_indices = @transform_2, window_bounds = array<i64: 1, 128>}, {pipeline_mode = #tpu.pipeline_mode<synchronous>, transform_indices = @transform_3, window_bounds = array<i64: 1, 128>}, {pipeline_mode = #tpu.pipeline_mode<synchronous>, transform_indices = @transform_4, window_bounds = array<i64: 1, 128>}, {pipeline_mode = #tpu.pipeline_mode<synchronous>, transform_indices = @transform_5, window_bounds = array<i64: 1, 128>}]} {
    %c0_i32 = arith.constant 0 : i32
    %0 = arith.cmpi eq, %arg0, %c0_i32 : i32
    %1 = arith.extui %0 : i1 to i32
    %c0_i32_0 = arith.constant 0 : i32
    %2 = arith.cmpi ne, %1, %c0_i32_0 : i32
    scf.if %2 {
      %cst_16 = arith.constant 0.000000e+00 : f32
      %21 = vector.broadcast %cst_16 : f32 to vector<1x128xf32>
      %c0_17 = arith.constant 0 : index
      %c0_18 = arith.constant 0 : index
      %22 = vector.load %arg5[%c0_17, %c0_18] : memref<1x128xf32, #tpu.memory_space<vmem>>, vector<1x128xf32>
      tpu.vector_store %arg5[%c0_17, %c0_18], %21 {strides = array<i32>} : memref<1x128xf32, #tpu.memory_space<vmem>>, vector<1x128xf32>,
      %cst_19 = arith.constant 0.000000e+00 : f32
      %23 = vector.broadcast %cst_19 : f32 to vector<1x128xf32>
      %c0_20 = arith.constant 0 : index
      %c0_21 = arith.constant 0 : index
      %24 = vector.load %arg6[%c0_20, %c0_21] : memref<1x128xf32, #tpu.memory_space<vmem>>, vector<1x128xf32>
      tpu.vector_store %arg6[%c0_20, %c0_21], %23 {strides = array<i32>} : memref<1x128xf32, #tpu.memory_space<vmem>>, vector<1x128xf32>,
    } else {
    }
    %c0 = arith.constant 0 : index
    %c0_1 = arith.constant 0 : index
    %3 = vector.load %arg1[%c0, %c0_1] : memref<8x128xf32, #tpu.memory_space<vmem>>, vector<8x128xf32>
    %4 = arith.truncf %3 : vector<8x128xf32> to vector<8x128xbf16>
    %c0_2 = arith.constant 0 : index
    %c0_3 = arith.constant 0 : index
    %5 = vector.load %arg2[%c0_2, %c0_3] : memref<128x128xbf16, #tpu.memory_space<vmem>>, vector<128x128xbf16>
    %cst = arith.constant dense<0.000000e+00> : vector<8x128xf32>
    %6 = tpu.matmul %4, %5, %cst {dimension_numbers = #tpu.dot_dimension_numbers<[1], [0], [0], [1], [0, 0, 1, 1], [], []>} : vector<8x128xbf16>, vector<128x128xbf16>, vector<8x128xf32> -> vector<8x128xf32>
    %c0_4 = arith.constant 0 : index
    %c0_5 = arith.constant 0 : index
    %7 = vector.load %arg5[%c0_4, %c0_5] : memref<1x128xf32, #tpu.memory_space<vmem>>, vector<1x128xf32>
    %cst_6 = arith.constant dense<0.000000e+00> : vector<128xf32>
    %8 = vector.multi_reduction <add>, %6, %cst_6 [0] : vector<8x128xf32> to vector<128xf32>
    %9 = vector.shape_cast %8 : vector<128xf32> to vector<1x128xf32>
    %10 = arith.addf %7, %9 : vector<1x128xf32>
    %c0_7 = arith.constant 0 : index
    %c0_8 = arith.constant 0 : index
    %11 = vector.load %arg5[%c0_7, %c0_8] : memref<1x128xf32, #tpu.memory_space<vmem>>, vector<1x128xf32>
    tpu.vector_store %arg5[%c0_7, %c0_8], %10 {strides = array<i32>} : memref<1x128xf32, #tpu.memory_space<vmem>>, vector<1x128xf32>,
    %c0_9 = arith.constant 0 : index
    %c0_10 = arith.constant 0 : index
    %12 = vector.load %arg6[%c0_9, %c0_10] : memref<1x128xf32, #tpu.memory_space<vmem>>, vector<1x128xf32>
    %13 = arith.mulf %6, %6 : vector<8x128xf32>
    %cst_11 = arith.constant dense<0.000000e+00> : vector<128xf32>
    %14 = vector.multi_reduction <add>, %13, %cst_11 [0] : vector<8x128xf32> to vector<128xf32>
    %15 = vector.shape_cast %14 : vector<128xf32> to vector<1x128xf32>
    %16 = arith.addf %12, %15 : vector<1x128xf32>
    %c0_12 = arith.constant 0 : index
    %c0_13 = arith.constant 0 : index
    %17 = vector.load %arg6[%c0_12, %c0_13] : memref<1x128xf32, #tpu.memory_space<vmem>>, vector<1x128xf32>
    tpu.vector_store %arg6[%c0_12, %c0_13], %16 {strides = array<i32>} : memref<1x128xf32, #tpu.memory_space<vmem>>, vector<1x128xf32>,
    %c0_i32_14 = arith.constant 0 : i32
    %18 = arith.cmpi eq, %arg0, %c0_i32_14 : i32
    %19 = arith.extui %18 : i1 to i32
    %c0_i32_15 = arith.constant 0 : i32
    %20 = arith.cmpi ne, %19, %c0_i32_15 : i32
    scf.if %20 {
      %c0_16 = arith.constant 0 : index
      %c0_17 = arith.constant 0 : index
      %21 = vector.load %arg5[%c0_16, %c0_17] : memref<1x128xf32, #tpu.memory_space<vmem>>, vector<1x128xf32>
      %cst_18 = arith.constant 1.250000e-01 : f32
      %22 = vector.broadcast %cst_18 : f32 to vector<1x128xf32>
      %23 = arith.mulf %21, %22 : vector<1x128xf32>
      %c0_19 = arith.constant 0 : index
      %c0_20 = arith.constant 0 : index
      %24 = vector.load %arg6[%c0_19, %c0_20] : memref<1x128xf32, #tpu.memory_space<vmem>>, vector<1x128xf32>
      %cst_21 = arith.constant 1.250000e-01 : f32
      %25 = vector.broadcast %cst_21 : f32 to vector<1x128xf32>
      %26 = arith.mulf %24, %25 : vector<1x128xf32>
      %27 = arith.mulf %23, %23 : vector<1x128xf32>
      %28 = arith.subf %26, %27 : vector<1x128xf32>
      %c0_22 = arith.constant 0 : index
      %c0_23 = arith.constant 0 : index
      %29 = vector.load %arg3[%c0_22, %c0_23] : memref<1x128xf32, #tpu.memory_space<vmem>>, vector<1x128xf32>
      %cst_24 = arith.constant 9.99999974E-6 : f32
      %30 = vector.broadcast %cst_24 : f32 to vector<1x128xf32>
      %31 = arith.addf %28, %30 : vector<1x128xf32>
      %32 = math.rsqrt %31 : vector<1x128xf32>
      %33 = arith.mulf %29, %32 : vector<1x128xf32>
      %c0_25 = arith.constant 0 : index
      %c0_26 = arith.constant 0 : index
      %34 = vector.load %arg5[%c0_25, %c0_26] : memref<1x128xf32, #tpu.memory_space<vmem>>, vector<1x128xf32>
      tpu.vector_store %arg5[%c0_25, %c0_26], %33 {strides = array<i32>} : memref<1x128xf32, #tpu.memory_space<vmem>>, vector<1x128xf32>,
      %c0_27 = arith.constant 0 : index
      %c0_28 = arith.constant 0 : index
      %35 = vector.load %arg4[%c0_27, %c0_28] : memref<1x128xf32, #tpu.memory_space<vmem>>, vector<1x128xf32>
      %36 = arith.mulf %23, %33 : vector<1x128xf32>
      %37 = arith.subf %35, %36 : vector<1x128xf32>
      %c0_29 = arith.constant 0 : index
      %c0_30 = arith.constant 0 : index
      %38 = vector.load %arg6[%c0_29, %c0_30] : memref<1x128xf32, #tpu.memory_space<vmem>>, vector<1x128xf32>
      tpu.vector_store %arg6[%c0_29, %c0_30], %37 {strides = array<i32>} : memref<1x128xf32, #tpu.memory_space<vmem>>, vector<1x128xf32>,
    } else {
    }
    return
  }
  func.func @transform_0(%arg0: i32) -> (i32, i32) {
    %c0_i32 = arith.constant 0 : i32
    %c0_i32_0 = arith.constant 0 : i32
    return %arg0, %c0_i32 : i32, i32
  }
  func.func @transform_1(%arg0: i32) -> (i32, i32) {
    %c0_i32 = arith.constant 0 : i32
    %c0_i32_0 = arith.constant 0 : i32
    %c0_i32_1 = arith.constant 0 : i32
    return %c0_i32, %c0_i32_0 : i32, i32
  }
  func.func @transform_2(%arg0: i32) -> (i32, i32) {
    %c0_i32 = arith.constant 0 : i32
    %c0_i32_0 = arith.constant 0 : i32
    %c0_i32_1 = arith.constant 0 : i32
    return %c0_i32, %c0_i32_0 : i32, i32
  }
  func.func @transform_3(%arg0: i32) -> (i32, i32) {
    %c0_i32 = arith.constant 0 : i32
    %c0_i32_0 = arith.constant 0 : i32
    %c0_i32_1 = arith.constant 0 : i32
    return %c0_i32, %c0_i32_0 : i32, i32
  }
  func.func @transform_4(%arg0: i32) -> (i32, i32) {
    %c0_i32 = arith.constant 0 : i32
    %c0_i32_0 = arith.constant 0 : i32
    %c0_i32_1 = arith.constant 0 : i32
    return %c0_i32, %c0_i32_0 : i32, i32
  }
  func.func @transform_5(%arg0: i32) -> (i32, i32) {
    %c0_i32 = arith.constant 0 : i32
    %c0_i32_0 = arith.constant 0 : i32
    %c0_i32_1 = arith.constant 0 : i32
    return %c0_i32, %c0_i32_0 : i32, i32
  }
}

</mosaic_0001>

<bundles_post_ra>
// kernel: branch_forward.2
= control target key start
LH: loop header
LB: loop body
LE: loop exit
PB: predicated region body
PF: predicated region fallthrough
CT: control target
= control target key end

     0   :  { %11 = vsyncpa [#allocation3], 0  ;;  %s413_s0 = inlined_call_operand.vmem [shape: f32[8,128], index: 0, kind: input, shape index: {}]   ;;  %s414_s1 = inlined_call_operand.hbm [shape: bf16[128,128], index: 1, kind: input, shape index: {}]   ;;  %s415_s2 = inlined_call_operand.hbm [shape: f32[1,128], index: 2, kind: input, shape index: {}]   ;;  %s416_s3 = inlined_call_operand.hbm [shape: f32[1,128], index: 3, kind: input, shape index: {}]   ;;  %s417_s4 = inlined_call_operand.vmem [shape: f32[1,128], index: 4, kind: output, shape index: {0}]   ;;  %s418_s5 = inlined_call_operand.vmem [shape: f32[1,128], index: 5, kind: output, shape index: {1}]  }
   0x1   :  { %12 = vsyncpa [#allocation5], 0  ;;  %s334_s18 = smov [#allocation4]   ;;  %s335_s20 = smov [#allocation2]  }
   0x2   :  { %s33_s19 = sshll.u32 %s334_s18, 4  ;;  %s20_s21 = sshll.u32 %s335_s20, 4  ;;  %s34_s19 = int_to_ptr.vmem [resolvable:$true] %s33_s19  ;;  %s21_s21 = int_to_ptr.vmem [resolvable:$true] %s20_s21 }
   0x3   :  { %s278_s22 = scalar_lea.vmem %s34_s19, 16  ;;  %s282_s23 = scalar_lea.vmem %s34_s19, 32 }
   0x4   :  { %p279_p0 = scmp.ne.s32.totalorder %s34_s19, %s278_s22  ;;  %p283_p1 = scmp.lt.s32.totalorder %s34_s19, %s34_s19 }
   0x5   :  { %p284_p2 = scmp.lt.s32.totalorder %s282_s23, %s278_s22 }
   0x7   :  { %p285_p3 = por %p284_p2, %p283_p1 }
   0x9   :  { %p286_p4 = pnand %p285_p3, %p279_p0 }
   0xb   :  { %289 = shalt.err (!%p286_p4)
}
   0xc   :  { %36 = dma.hbm_to_vmem [thread:$0]  %s415_s2, 16, %s34_s19, [#allocation5]  }
   0xd   :  { %s298_s26 = scalar_lea.vmem %s21_s21, 1024  ;;  %p303_p6 = scmp.lt.s32.totalorder %s21_s21, %s21_s21 }
   0xe   :  { %p299_p5 = scmp.ne.s32.totalorder %s21_s21, %s298_s26  ;;  %p304_p7 = scmp.lt.s32.totalorder %s298_s26, %s298_s26 }
  0x10   :  { %p305_p8 = por %p304_p7, %p303_p6 }
  0x12   :  { %p306_p9 = pnand %p305_p8, %p299_p5 }
  0x14   :  { %309 = shalt.err (!%p306_p9)
}
  0x15   :  { %s336_s27 = smov 64   ;;  %s337_s28 = smov 4  }
  0x16   :  { %26 = dma.hbm_to_vmem [thread:$0]  %s414_s1, 1024, %s21_s21, [#allocation3], %s336_s27, %s336_s27, %s337_s28  }
  0x17   :  { %s338_s6 = smov [#allocation6]  }
  0x18   :  { %s43_s7 = sshll.u32 %s338_s6, 4  ;;  %s44_s7 = int_to_ptr.vmem [resolvable:$true] %s43_s7 }
  0x19   :  { %s318_s8 = scalar_lea.vmem %s44_s7, 16  ;;  %s322_s9 = scalar_lea.vmem %s44_s7, 32 }
  0x1a   :  { %p319_p10 = scmp.ne.s32.totalorder %s44_s7, %s318_s8  ;;  %p323_p11 = scmp.lt.s32.totalorder %s44_s7, %s44_s7 }
  0x1b   :  { %p324_p12 = scmp.lt.s32.totalorder %s322_s9, %s318_s8 }
  0x1d   :  { %p325_p13 = por %p324_p12, %p323_p11 }
  0x1f   :  { %p326_p0 = pnand %p325_p13, %p319_p10 }
  0x21   :  { %329 = shalt.err (!%p326_p0)
}
  0x22   :  { %46 = dma.hbm_to_vmem [thread:$0]  %s416_s3, 16, %s44_s7, [#allocation5]  }
  0x23   :  { %330 = dma.done.wait [#allocation3], 1024  }
  0x24   :  { %331 = vsyncadd [#allocation3], 4294966272 }
  0x25   :  { %332 = dma.done.wait [#allocation5], 32  }
  0x26   :  { %333 = vsyncadd [#allocation5], 4294967264  ;;  %v339_v0 = vmov 0.0   ;;  %vm340_vm0 = vmmov 0   ;;  %v260_v1 = vld [vmem:[#allocation2 + $0x38] sm:$0xff]   ;;  %v261_v2 = vld [vmem:[#allocation2 + $0x30] sm:$0xff]  }
  0x27   :  { %233 = vmatprep.subr.bf16.mxu0 %v339_v0  ;;  %61 = vst [vmem:[%s417_s4] sm:$0x1] %v339_v0  ;;  %62 = vst [vmem:[%s418_s5] sm:$0x1] %v339_v0  ;;  %249 = vmatprep.mubr.msk.bf16.mxu0 %vm340_vm0, %v339_v0  ;;  %v262_v3 = vld [vmem:[#allocation2 + $0x28] sm:$0xff]   ;;  %v263_v4 = vld [vmem:[#allocation2 + $0x20] sm:$0xff]  }
  0x28   :  { %234 = vmatpush3.bf16.msra.mxu0 %v260_v1  ;;  %v264_v5 = vld [vmem:[#allocation2 + $0x18] sm:$0xff]   ;;  %v265_v6 = vld [vmem:[#allocation2 + $0x10] sm:$0xff]   ;;  %v266_v7 = vld [vmem:[#allocation2 + $0x8] sm:$0xff]  }
  0x29   :  { %235 = vmatprep.subr.bf16.mxu0 %v339_v0  ;;  %v267_v8 = vld [vmem:[#allocation2] sm:$0xff]  }
  0x2a   :  { %v63_v9 = vld [vmem:[%s413_s0] sm:$0xff] }
  0x2b   :  { %v64_v10 = vpack.c.bf16 %v63_v9, %v63_v9  ;;  %v197_v39 = vld [vmem:[#allocation4] sm:$0x1]  ;;  %v202_v42 = vld [vmem:[#allocation6] sm:$0x1] }
  0x2c   :  { %236 = vmatpush3.bf16.msra.mxu0 %v261_v2 }
  0x2d   :  { %237 = vmatprep.subr.bf16.mxu0 %v339_v0 }
  0x2e   :  { %v169_v25 = vld [vmem:[%s417_s4] sm:$0x1] }
  0x2f   :  { %v178_v28 = vld [vmem:[%s418_s5] sm:$0x1] }
  0x30   :  { %238 = vmatpush3.bf16.msra.mxu0 %v262_v3 }
  0x31   :  { %239 = vmatprep.subr.bf16.mxu0 %v339_v0 }
  0x34   :  { %240 = vmatpush3.bf16.msra.mxu0 %v263_v4 }
  0x35   :  { %241 = vmatprep.subr.bf16.mxu0 %v339_v0 }
  0x38   :  { %242 = vmatpush3.bf16.msra.mxu0 %v264_v5 }
  0x39   :  { %243 = vmatprep.subr.bf16.mxu0 %v339_v0 }
  0x3c   :  { %244 = vmatpush3.bf16.msra.mxu0 %v265_v6 }
  0x3d   :  { %245 = vmatprep.subr.bf16.mxu0 %v339_v0 }
  0x40   :  { %246 = vmatpush3.bf16.msra.mxu0 %v266_v7 }
  0x41   :  { %247 = vmatprep.subr.bf16.mxu0 %v339_v0 }
  0x44   :  { %248 = vmatpush3.bf16.msra.mxu0 %v267_v8 }
  0x47   :  { %250 = vmatmul.mubr.bf16.vlgmr.msra.gmra.mxu0 %v64_v10 }
 0x107   :  { %v163_v11 = vpop.f32.mrf.mxu0 }
 0x108   :  { %v170_v12 = vrot.slane %v163_v11, 4  ;;  %v179_v13 = vmul.f32 %v163_v11, %v163_v11 }
 0x109   :  { %v251_v14 = vpop.f32.mrf.mxu0 }
 0x10a   :  { %v171_v15 = vadd.f32 %v170_v12, %v163_v11  ;;  %v180_v16 = vrot.slane %v179_v13, 4 }
 0x10b   :  { %v166_v17 = vpop.f32.mrf.mxu0 }
 0x10c   :  { %v172_v18 = vrot.slane %v171_v15, 2  ;;  %v181_v19 = vadd.f32 %v180_v16, %v179_v13 }
 0x10d   :  { %v252_v20 = vpop.f32.mrf.mxu0 }
 0x10e   :  { %v173_v21 = vadd.f32 %v172_v18, %v171_v15  ;;  %v182_v22 = vrot.slane %v181_v19, 2 }
 0x110   :  { %v174_v23 = vrot.slane %v173_v21, 1  ;;  %v183_v24 = vadd.f32 %v182_v22, %v181_v19 }
 0x112   :  { %v175_v26 = vadd.f32 %v174_v23, %v173_v21  ;;  %v184_v27 = vrot.slane %v183_v24, 1 }
 0x114   :  { %v176_v29 = vadd.f32 %v175_v26, %v169_v25  ;;  %v185_v30 = vadd.f32 %v184_v27, %v183_v24 }
 0x116   :  { %177 = vst [vmem:[%s417_s4] sm:$0x1] %v176_v29  ;;  %v186_v31 = vadd.f32 %v185_v30, %v178_v28 }
 0x118   :  { %187 = vst [vmem:[%s418_s5] sm:$0x1] %v186_v31 }
 0x11d   :  { %v191_v32 = vld [vmem:[%s417_s4] sm:$0x1] }
 0x11e   :  { %v192_v33 = vmul.f32 0.125, %v191_v32 }
 0x11f   :  { %v193_v34 = vld [vmem:[%s418_s5] sm:$0x1] }
 0x120   :  { %v194_v35 = vmul.f32 0.125, %v193_v34  ;;  %v195_v36 = vmul.f32 %v192_v33, %v192_v33 }
 0x122   :  { %v196_v37 = vsub.f32 %v194_v35, %v195_v36 }
 0x124   :  { %v198_v38 = vadd.f32 1e-05, %v196_v37 }
 0x126   :  { %268 = vrsqrt.f32 %v198_v38 }
 0x133   :  { %v269_v40 = vpop.eup %268 }
 0x134   :  { %v200_v41 = vmul.f32 %v269_v40, %v197_v39 }
 0x136   :  { %201 = vst [vmem:[%s417_s4] sm:$0x1] %v200_v41  ;;  %v203_v43 = vmul.f32 %v200_v41, %v192_v33 }
 0x138   :  { %v204_v44 = vsub.f32 %v202_v42, %v203_v43 }
 0x13a   :  { %205 = vst [vmem:[%s418_s5] sm:$0x1] %v204_v44 }
 0x13b   :  { %214 = vsyncpa [#allocation3], 1 }
 0x13c   :  { %215 = vsyncpa [#allocation5], 1 }

// kernel: branch_forward.3
= control target key start
LH: loop header
LB: loop body
LE: loop exit
PB: predicated region body
PF: predicated region fallthrough
CT: control target
= control target key end

     0   :  { %11 = vsyncpa [#allocation3], 0  ;;  %s524_s0 = inlined_call_operand.vmem [shape: f32[8,128], index: 0, kind: input, shape index: {}]   ;;  %s525_s1 = inlined_call_operand.vmem [shape: bf16[128,128], index: 1, kind: input, shape index: {}]   ;;  %s526_s2 = inlined_call_operand.vmem [shape: f32[1,128], index: 2, kind: input, shape index: {}]   ;;  %s527_s3 = inlined_call_operand.vmem [shape: f32[1,128], index: 3, kind: input, shape index: {}]   ;;  %s528_s4 = inlined_call_operand.hbm [shape: bf16[128,128], index: 4, kind: input, shape index: {}]   ;;  %s529_s5 = inlined_call_operand.vmem [shape: f32[1,128], index: 5, kind: input, shape index: {}]   ;;  %s530_s6 = inlined_call_operand.hbm [shape: f32[8,128], index: 6, kind: output, shape index: {}]  }
   0x1   :  { %12 = vsyncpa [#allocation4], 0  ;;  %s441_s21 = smov [#allocation2]  }
   0x2   :  { %s26_s22 = sshll.u32 %s441_s21, 4  ;;  %s27_s22 = int_to_ptr.vmem [resolvable:$true] %s26_s22 }
   0x3   :  { %s405_s23 = scalar_lea.vmem %s27_s22, 1024  ;;  %p410_p1 = scmp.lt.s32.totalorder %s27_s22, %s27_s22 }
   0x4   :  { %p406_p0 = scmp.ne.s32.totalorder %s27_s22, %s405_s23  ;;  %p411_p2 = scmp.lt.s32.totalorder %s405_s23, %s405_s23 }
   0x6   :  { %p412_p3 = por %p411_p2, %p410_p1 }
   0x8   :  { %p413_p4 = pnand %p412_p3, %p406_p0 }
   0xa   :  { %416 = shalt.err (!%p413_p4)
}
   0xb   :  { %s442_s24 = smov 64   ;;  %s443_s25 = smov 4  }
   0xc   :  { %32 = dma.hbm_to_vmem [thread:$0]  %s528_s4, 1024, %s27_s22, [#allocation3], %s442_s24, %s442_s24, %s443_s25  }
   0xd   :  { %437 = dma.done.wait [#allocation3], 1024  }
   0xe   :  { %438 = vsyncadd [#allocation3], 4294966272  ;;  %v444_v0 = vmov 0.0   ;;  %vm445_vm0 = vmmov 0   ;;  %v379_v1 = vld [vmem:[%s525_s1 + $0x38] sm:$0xff]   ;;  %v380_v2 = vld [vmem:[%s525_s1 + $0x30] sm:$0xff]  }
   0xf   :  { %333 = vmatprep.subr.bf16.mxu0 %v444_v0  ;;  %349 = vmatprep.mubr.msk.bf16.mxu0 %vm445_vm0, %v444_v0  ;;  %v381_v3 = vld [vmem:[%s525_s1 + $0x28] sm:$0xff]   ;;  %v387_v4 = vld [vmem:[#allocation2 + $0x38] sm:$0xff]   ;;  %v382_v5 = vld [vmem:[%s525_s1 + $0x20] sm:$0xff]  }
  0x10   :  { %353 = vmatprep.subr.bf16.mxu1 %v444_v0  ;;  %369 = vmatprep.mubr.msk.bf16.mxu1 %vm445_vm0, %v444_v0  ;;  %v388_v6 = vld [vmem:[#allocation2 + $0x30] sm:$0xff]   ;;  %v383_v7 = vld [vmem:[%s525_s1 + $0x18] sm:$0xff]   ;;  %v389_v8 = vld [vmem:[#allocation2 + $0x28] sm:$0xff]  }
  0x11   :  { %334 = vmatpush3.bf16.msra.mxu0 %v379_v1  ;;  %354 = vmatpush3.bf16.msra.mxu1 %v387_v4  ;;  %v384_v9 = vld [vmem:[%s525_s1 + $0x10] sm:$0xff]   ;;  %v390_v10 = vld [vmem:[#allocation2 + $0x20] sm:$0xff]   ;;  %v385_v11 = vld [vmem:[%s525_s1 + $0x8] sm:$0xff]  }
  0x12   :  { %335 = vmatprep.subr.bf16.mxu0 %v444_v0  ;;  %355 = vmatprep.subr.bf16.mxu1 %v444_v0  ;;  %v391_v12 = vld [vmem:[#allocation2 + $0x18] sm:$0xff]   ;;  %v386_v13 = vld [vmem:[%s525_s1] sm:$0xff]   ;;  %v392_v15 = vld [vmem:[#allocation2 + $0x10] sm:$0xff]  }
  0x13   :  { %v39_v14 = vld [vmem:[%s524_s0] sm:$0xff]  ;;  %v393_v17 = vld [vmem:[#allocation2 + $0x8] sm:$0xff]  }
  0x14   :  { %v40_v16 = vpack.c.bf16 %v39_v14, %v39_v14  ;;  %v394_v18 = vld [vmem:[#allocation2] sm:$0xff]  }
  0x15   :  { %336 = vmatpush3.bf16.msra.mxu0 %v380_v2  ;;  %356 = vmatpush3.bf16.msra.mxu1 %v388_v6  ;;  %v304_v19 = vld [vmem:[%s526_s2] ss:$0 sm:$0xff]  ;;  %s446_s2 = smov [#allocation5]  }
  0x16   :  { %337 = vmatprep.subr.bf16.mxu0 %v444_v0  ;;  %357 = vmatprep.subr.bf16.mxu1 %v444_v0  ;;  %v305_v21 = vld [vmem:[%s527_s3] ss:$0 sm:$0xff]  ;;  %s287_s3 = sshll.u32 %s446_s2, 4  ;;  %s288_s3 = int_to_ptr.vmem [resolvable:$true] %s287_s3 }
  0x17   :  { %v306_v29 = vld [vmem:[%s529_s5] ss:$0 sm:$0xff]  ;;  %s417_s25 = scalar_lea.vmem %s288_s3, 128  ;;  %p422_p6 = scmp.lt.s32.totalorder %s288_s3, %s288_s3 }
  0x18   :  { %p418_p5 = scmp.ne.s32.totalorder %s288_s3, %s417_s25  ;;  %p423_p7 = scmp.lt.s32.totalorder %s417_s25, %s417_s25 }
  0x19   :  { %338 = vmatpush3.bf16.msra.mxu0 %v381_v3  ;;  %358 = vmatpush3.bf16.msra.mxu1 %v389_v8 }
  0x1a   :  { %339 = vmatprep.subr.bf16.mxu0 %v444_v0  ;;  %359 = vmatprep.subr.bf16.mxu1 %v444_v0  ;;  %p424_p8 = por %p423_p7, %p422_p6 }
  0x1c   :  { %p425_p9 = pnand %p424_p8, %p418_p5 }
  0x1d   :  { %340 = vmatpush3.bf16.msra.mxu0 %v382_v5  ;;  %360 = vmatpush3.bf16.msra.mxu1 %v390_v10 }
  0x1e   :  { %341 = vmatprep.subr.bf16.mxu0 %v444_v0  ;;  %361 = vmatprep.subr.bf16.mxu1 %v444_v0 }
  0x21   :  { %342 = vmatpush3.bf16.msra.mxu0 %v383_v7  ;;  %362 = vmatpush3.bf16.msra.mxu1 %v391_v12 }
  0x22   :  { %343 = vmatprep.subr.bf16.mxu0 %v444_v0  ;;  %363 = vmatprep.subr.bf16.mxu1 %v444_v0 }
  0x25   :  { %344 = vmatpush3.bf16.msra.mxu0 %v384_v9  ;;  %364 = vmatpush3.bf16.msra.mxu1 %v392_v15 }
  0x26   :  { %345 = vmatprep.subr.bf16.mxu0 %v444_v0  ;;  %365 = vmatprep.subr.bf16.mxu1 %v444_v0 }
  0x29   :  { %346 = vmatpush3.bf16.msra.mxu0 %v385_v11  ;;  %366 = vmatpush3.bf16.msra.mxu1 %v393_v17 }
  0x2a   :  { %347 = vmatprep.subr.bf16.mxu0 %v444_v0  ;;  %367 = vmatprep.subr.bf16.mxu1 %v444_v0 }
  0x2d   :  { %348 = vmatpush3.bf16.msra.mxu0 %v386_v13  ;;  %368 = vmatpush3.bf16.msra.mxu1 %v394_v18 }
  0x30   :  { %350 = vmatmul.mubr.bf16.vlgmr.msra.gmra.mxu0 %v40_v16 }
  0xf0   :  { %v139_v20 = vpop.f32.mrf.mxu0 }
  0xf1   :  { %v152_v22 = vmul.f32 %v304_v19, %v139_v20 }
  0xf2   :  { %v351_v23 = vpop.f32.mrf.mxu0 }
  0xf3   :  { %v160_v24 = vadd.f32 %v305_v21, %v152_v22 }
  0xf4   :  { %v142_v25 = vpop.f32.mrf.mxu0 }
  0xf5   :  { %v161_v26 = vmax.f32 %v160_v24, 0.0 }
  0xf6   :  { %v352_v27 = vpop.f32.mrf.mxu0 }
  0xf7   :  { %v162_v28 = vpack.c.bf16 %v161_v26, %v161_v26 }
  0xf9   :  { %370 = vmatmul.mubr.bf16.vlgmr.msra.gmra.mxu1 %v162_v28 }
 0x1b9   :  { %v268_v30 = vpop.f32.mrf.mxu1 }
 0x1ba   :  { %v269_v31 = vadd.f32 %v306_v29, %v268_v30 }
 0x1bb   :  { %v371_v32 = vpop.f32.mrf.mxu1 }
 0x1bc   :  { %v274_v33 = vmul.f32 %v269_v31, %v269_v31 }
 0x1bd   :  { %v271_v34 = vpop.f32.mrf.mxu1 }
 0x1be   :  { %275 = vadd.xlane.f32.xlu0 %v274_v33 }
 0x1bf   :  { %v372_v35 = vpop.f32.mrf.mxu1 }
 0x247   :  { %v276_v36 = vpop.xlane.xlu0 %275 }
 0x248   :  { %v277_v37 = vmax.f32 %v276_v36, 1e-20 }
 0x24a   :  { %395 = vrsqrt.f32 %v277_v37 }
 0x257   :  { %v396_v38 = vpop.eup %395 }
 0x258   :  { %v279_v39 = vmul.f32 %v396_v38, %v269_v31 }
 0x25a   :  { %280 = vst [vmem:[#allocation5] sm:$0xff] %v279_v39 }
 0x25b   :  { %428 = shalt.err (!%p425_p9)
}
 0x25c   :  { %290 = dma.vmem_to_hbm [thread:$0]  %s288_s3, 128, %s530_s6, [#allocation4]  }
 0x25d   :  { %439 = dma.done.wait [#allocation4], 128  }
 0x25e   :  { %440 = vsyncadd [#allocation4], 4294967168 }
 0x25f   :  { %294 = vsyncpa [#allocation3], 1 }
 0x260   :  { %295 = vsyncpa [#allocation4], 1 }

</bundles_post_ra>
